<compile_context>
chip_gen: v6e
topology: v6e:2x2x1
jax: 0.10.0
libtpu: 0.0.40
codegen_flags: <defaults>
</compile_context>

<pallas_src>
import jax
import jax.numpy as jnp
from jax import lax
from jax.experimental import pallas as pl
from jax.experimental.pallas import tpu as pltpu


def _round_up(x, m):
    return ((x + m - 1) // m) * m


def mlp_kernel(x_ref, w1_ref, b1_ref, w2_ref, b2_ref, w3_ref, b3_ref, o_ref):
    # x_ref: (tb, in_dim) native layout.  fc1 contracts in_dim of both operands
    # (trans-B matmul) so the batch maps to the lane axis; h1=(64,tb),
    # h2=(32,tb) and the final (1,tb) store are all lane-dense.  MXU
    # accumulates in f32 (preferred_element_type); bias-add + ReLU stay f32 on
    # the VPU (v5e-safe even when x/w1 are bf16) and h1/h2 are NOT down-cast
    # before fc2/fc3.
    h1 = lax.dot_general(
        w1_ref[...], x_ref[...],
        dimension_numbers=(((1,), (1,)), ((), ())),
        preferred_element_type=jnp.float32)
    h1 = jnp.maximum(h1 + b1_ref[...], 0.0)                        # (64, tb) f32
    h2 = jnp.dot(w2_ref[...], h1, preferred_element_type=jnp.float32)
    h2 = jnp.maximum(h2 + b2_ref[...], 0.0)                        # (32, tb) f32
    out = jnp.dot(w3_ref[...], h2, preferred_element_type=jnp.float32)
    o_ref[...] = (out + b3_ref[...]).astype(o_ref.dtype)           # (1, tb)


def regression_model_forward(x, params, *, block_b=8192, min_grid=4):
    """Forward pass of RegressionModel.

    x: (B, input_dim), float32 (or bfloat16 to halve HBM traffic on the
       dominant input stream; accumulation and the epilogue stay float32).
    params: torch-layout weights {"w1": (64,in), "b1": (64,1), "w2": (32,64),
            "b2": (32,1), "w3": (1,32), "b3": (1,1)} (all float32).
    Returns (B, 1) float32.
    """
    B, in_dim = x.shape

    # Batch tile: large (amortizes per-step overhead), multiple of 128, but
    # small enough that the grid has >= min_grid steps (v7x megacore + pipeline
    # overlap).  Batches <= 128 use a single full-array block.
    if B <= 128:
        tb = B
    else:
        tb_cap = _round_up(block_b, 128)
        tb_split = _round_up(-(-B // max(min_grid, 1)), 128)
        tb = max(128, min(tb_cap, tb_split))
    grid = (pl.cdiv(B, tb),)

    # Only fc1 touches x, so only w1 follows x's dtype; fc2/fc3 weights,
    # biases and all intermediates stay float32.
    w1 = params["w1"].astype(x.dtype)
    w2, w3 = params["w2"], params["w3"]
    b1, b2, b3 = params["b1"], params["b2"], params["b3"]

    def resident(shape):
        # Same block index every grid step -> operand stays resident in VMEM.
        return pl.BlockSpec(shape, lambda i: (0, 0))

    flops = 2 * B * (in_dim * 64 + 64 * 32 + 32 * 1)
    bytes_accessed = (
        x.size * x.dtype.itemsize
        + sum(a.size * a.dtype.itemsize for a in (w1, b1, w2, b2, w3, b3))
        + B * 4)

    out = pl.pallas_call(
        mlp_kernel,
        out_shape=jax.ShapeDtypeStruct((1, B), jnp.float32),
        grid=grid,
        in_specs=[
            pl.BlockSpec((tb, in_dim), lambda i: (i, 0)),   # x tile, pipelined
            resident(w1.shape), resident(b1.shape),
            resident(w2.shape), resident(b2.shape),
            resident(w3.shape), resident(b3.shape),
        ],
        out_specs=pl.BlockSpec((1, tb), lambda i: (0, i)),  # lane-dense output
        compiler_params=pltpu.CompilerParams(
            dimension_semantics=("parallel",)),
        cost_estimate=pl.CostEstimate(
            flops=flops, transcendentals=0, bytes_accessed=bytes_accessed),
    )(x, w1, b1, w2, b2, w3, b3)

    return out.reshape(B, 1)


def init_params(key, input_dim):
    """Deterministic init mimicking nn.Linear's U(-1/sqrt(fan_in), 1/sqrt(fan_in)).

    Weights in torch layout (out_features, in_features); biases as column
    vectors (out_features, 1) to match the lane-dense kernel orientation.
    """
    def linear(k, fan_in, fan_out):
        kw, kb = jax.random.split(k)
        bound = 1.0 / jnp.sqrt(fan_in)
        w = jax.random.uniform(kw, (fan_out, fan_in), jnp.float32, -bound, bound)
        b = jax.random.uniform(kb, (fan_out, 1), jnp.float32, -bound, bound)
        return w, b

    k1, k2, k3 = jax.random.split(key, 3)
    w1, b1 = linear(k1, input_dim, 64)
    w2, b2 = linear(k2, 64, 32)
    w3, b3 = linear(k3, 32, 1)
    return {"w1": w1, "b1": b1, "w2": w2, "b2": b2, "w3": w3, "b3": b3}


if __name__ == "__main__":
    # 5 features: area, bed, bath, age, dist (rent is the regression target).
    input_dim = 5
    key = jax.random.PRNGKey(0)
    k_x, k_x2, k_p = jax.random.split(key, 3)
    params = init_params(k_p, input_dim)

    def reference(x, p):
        h = jnp.maximum(x @ p["w1"].T + p["b1"].T, 0.0)
        h = jnp.maximum(h @ p["w2"].T + p["b2"].T, 0.0)
        return h @ p["w3"].T + p["b3"].T

    # Small batch: single full-array block (B <= 128 path, no padding).
    x_small = jax.random.normal(k_x, (8, input_dim), dtype=jnp.float32)
    out_small = jax.block_until_ready(regression_model_forward(x_small, params))
    ref_small = reference(x_small, params)
    assert out_small.shape == (8, 1)
    assert jnp.allclose(out_small, ref_small, atol=1e-4, rtol=1e-4)

    # Non-multiple-of-128 batch: tb=128, grid=(3,), partial final block.
    # Exercises pipelined x/out tiles, resident weights, the "parallel" batch
    # axis, and the masked out-of-bounds tail (no wrapper-side transpose/pad).
    x_big = jax.random.normal(k_x2, (300, input_dim), dtype=jnp.float32)
    out_big = jax.block_until_ready(regression_model_forward(x_big, params))
    ref_big = reference(x_big, params)
    assert out_big.shape == (300, 1)
    assert jnp.allclose(out_big, ref_big, atol=1e-4, rtol=1e-4)

    # bf16 x (and therefore bf16 w1) halves the dominant HBM stream; f32 MXU
    # accumulation + f32 bias/ReLU epilogue keep the error to bf16 input rounding.
    out_bf16 = jax.block_until_ready(
        regression_model_forward(x_big.astype(jnp.bfloat16), params))
    assert out_bf16.shape == (300, 1)
    assert jnp.allclose(out_bf16, ref_big, atol=0.1, rtol=0.1)

    print("KERNEL_OK")
</pallas_src>

<mosaic_0001>
module attributes {stable_mosaic.version = 11 : i64} {
  func.func @mlp_kernel(%arg0: i32, %arg1: memref<8x5xf32, #tpu.memory_space<vmem>>, %arg2: memref<64x5xf32, #tpu.memory_space<vmem>>, %arg3: memref<64x1xf32, #tpu.memory_space<vmem>>, %arg4: memref<32x64xf32, #tpu.memory_space<vmem>>, %arg5: memref<32x1xf32, #tpu.memory_space<vmem>>, %arg6: memref<1x32xf32, #tpu.memory_space<vmem>>, %arg7: memref<1x1xf32, #tpu.memory_space<vmem>>, %arg8: memref<1x8xf32, #tpu.memory_space<vmem>>) attributes {dimension_semantics = [#tpu.dimension_semantics<parallel>], iteration_bounds = array<i64: 1>, scalar_prefetch = 0 : i64, scratch_operands = 0 : i64, tpu.core_type = #tpu.core_type<tc>, window_params = [{transform_indices = @transform_0, window_bounds = array<i64: 8, 5>}, {pipeline_mode = #tpu.pipeline_mode<synchronous>, transform_indices = @transform_1, window_bounds = array<i64: 64, 5>}, {pipeline_mode = #tpu.pipeline_mode<synchronous>, transform_indices = @transform_2, window_bounds = array<i64: 64, 1>}, {pipeline_mode = #tpu.pipeline_mode<synchronous>, transform_indices = @transform_3, window_bounds = array<i64: 32, 64>}, {pipeline_mode = #tpu.pipeline_mode<synchronous>, transform_indices = @transform_4, window_bounds = array<i64: 32, 1>}, {pipeline_mode = #tpu.pipeline_mode<synchronous>, transform_indices = @transform_5, window_bounds = array<i64: 1, 32>}, {pipeline_mode = #tpu.pipeline_mode<synchronous>, transform_indices = @transform_6, window_bounds = array<i64: 1, 1>}, {transform_indices = @transform_7, window_bounds = array<i64: 1, 8>}]} {
    %c0 = arith.constant 0 : index
    %c0_0 = arith.constant 0 : index
    %0 = vector.load %arg2[%c0, %c0_0] : memref<64x5xf32, #tpu.memory_space<vmem>>, vector<64x5xf32>
    %c0_1 = arith.constant 0 : index
    %c0_2 = arith.constant 0 : index
    %1 = vector.load %arg1[%c0_1, %c0_2] : memref<8x5xf32, #tpu.memory_space<vmem>>, vector<8x5xf32>
    %cst = arith.constant dense<0.000000e+00> : vector<64x8xf32>
    %2 = tpu.matmul %0, %1, %cst {dimension_numbers = #tpu.dot_dimension_numbers<[1], [1], [0], [0], [0, 0, 1, 0], [], []>} : vector<64x5xf32>, vector<8x5xf32>, vector<64x8xf32> -> vector<64x8xf32>
    %c0_3 = arith.constant 0 : index
    %c0_4 = arith.constant 0 : index
    %3 = vector.load %arg3[%c0_3, %c0_4] : memref<64x1xf32, #tpu.memory_space<vmem>>, vector<64x1xf32>
    %4 = vector.broadcast %3 : vector<64x1xf32> to vector<64x8xf32>
    %5 = arith.addf %2, %4 : vector<64x8xf32>
    %cst_5 = arith.constant 0.000000e+00 : f32
    %6 = vector.broadcast %cst_5 : f32 to vector<64x8xf32>
    %7 = arith.maximumf %5, %6 : vector<64x8xf32>
    %c0_6 = arith.constant 0 : index
    %c0_7 = arith.constant 0 : index
    %8 = vector.load %arg4[%c0_6, %c0_7] : memref<32x64xf32, #tpu.memory_space<vmem>>, vector<32x64xf32>
    %cst_8 = arith.constant dense<0.000000e+00> : vector<32x8xf32>
    %9 = tpu.matmul %8, %7, %cst_8 {dimension_numbers = #tpu.dot_dimension_numbers<[1], [0], [0], [1], [0, 0, 1, 1], [], []>} : vector<32x64xf32>, vector<64x8xf32>, vector<32x8xf32> -> vector<32x8xf32>
    %c0_9 = arith.constant 0 : index
    %c0_10 = arith.constant 0 : index
    %10 = vector.load %arg5[%c0_9, %c0_10] : memref<32x1xf32, #tpu.memory_space<vmem>>, vector<32x1xf32>
    %11 = vector.broadcast %10 : vector<32x1xf32> to vector<32x8xf32>
    %12 = arith.addf %9, %11 : vector<32x8xf32>
    %cst_11 = arith.constant 0.000000e+00 : f32
    %13 = vector.broadcast %cst_11 : f32 to vector<32x8xf32>
    %14 = arith.maximumf %12, %13 : vector<32x8xf32>
    %c0_12 = arith.constant 0 : index
    %c0_13 = arith.constant 0 : index
    %15 = vector.load %arg6[%c0_12, %c0_13] : memref<1x32xf32, #tpu.memory_space<vmem>>, vector<1x32xf32>
    %cst_14 = arith.constant dense<0.000000e+00> : vector<1x8xf32>
    %16 = tpu.matmul %15, %14, %cst_14 {dimension_numbers = #tpu.dot_dimension_numbers<[1], [0], [0], [1], [0, 0, 1, 1], [], []>} : vector<1x32xf32>, vector<32x8xf32>, vector<1x8xf32> -> vector<1x8xf32>
    %c0_15 = arith.constant 0 : index
    %c0_16 = arith.constant 0 : index
    %17 = vector.load %arg7[%c0_15, %c0_16] : memref<1x1xf32, #tpu.memory_space<vmem>>, vector<1x1xf32>
    %18 = vector.broadcast %17 : vector<1x1xf32> to vector<1x8xf32>
    %19 = arith.addf %16, %18 : vector<1x8xf32>
    %c0_17 = arith.constant 0 : index
    %c0_18 = arith.constant 0 : index
    %20 = vector.load %arg8[%c0_17, %c0_18] : memref<1x8xf32, #tpu.memory_space<vmem>>, vector<1x8xf32>
    tpu.vector_store %arg8[%c0_17, %c0_18], %19 {strides = array<i32>} : memref<1x8xf32, #tpu.memory_space<vmem>>, vector<1x8xf32>,
    return
  }
  func.func @transform_0(%arg0: i32) -> (i32, i32) {
    %c0_i32 = arith.constant 0 : i32
    %c0_i32_0 = arith.constant 0 : i32
    return %arg0, %c0_i32 : i32, i32
  }
  func.func @transform_1(%arg0: i32) -> (i32, i32) {
    %c0_i32 = arith.constant 0 : i32
    %c0_i32_0 = arith.constant 0 : i32
    %c0_i32_1 = arith.constant 0 : i32
    return %c0_i32, %c0_i32_0 : i32, i32
  }
  func.func @transform_2(%arg0: i32) -> (i32, i32) {
    %c0_i32 = arith.constant 0 : i32
    %c0_i32_0 = arith.constant 0 : i32
    %c0_i32_1 = arith.constant 0 : i32
    return %c0_i32, %c0_i32_0 : i32, i32
  }
  func.func @transform_3(%arg0: i32) -> (i32, i32) {
    %c0_i32 = arith.constant 0 : i32
    %c0_i32_0 = arith.constant 0 : i32
    %c0_i32_1 = arith.constant 0 : i32
    return %c0_i32, %c0_i32_0 : i32, i32
  }
  func.func @transform_4(%arg0: i32) -> (i32, i32) {
    %c0_i32 = arith.constant 0 : i32
    %c0_i32_0 = arith.constant 0 : i32
    %c0_i32_1 = arith.constant 0 : i32
    return %c0_i32, %c0_i32_0 : i32, i32
  }
  func.func @transform_5(%arg0: i32) -> (i32, i32) {
    %c0_i32 = arith.constant 0 : i32
    %c0_i32_0 = arith.constant 0 : i32
    %c0_i32_1 = arith.constant 0 : i32
    return %c0_i32, %c0_i32_0 : i32, i32
  }
  func.func @transform_6(%arg0: i32) -> (i32, i32) {
    %c0_i32 = arith.constant 0 : i32
    %c0_i32_0 = arith.constant 0 : i32
    %c0_i32_1 = arith.constant 0 : i32
    return %c0_i32, %c0_i32_0 : i32, i32
  }
  func.func @transform_7(%arg0: i32) -> (i32, i32) {
    %c0_i32 = arith.constant 0 : i32
    %c0_i32_0 = arith.constant 0 : i32
    return %c0_i32, %arg0 : i32, i32
  }
}

</mosaic_0001>

<bundles_post_ra>
// kernel: tpu_custom_call.1
= control target key start
LH: loop header
LB: loop body
LE: loop exit
PB: predicated region body
PF: predicated region fallthrough
CT: control target
= control target key end

     0   :  { %s715_s0 = inlined_call_operand.vmem [shape: f32[8,5], index: 0, kind: input, shape index: {}]   ;;  %s716_s1 = inlined_call_operand.vmem [shape: f32[64,5], index: 1, kind: input, shape index: {}]   ;;  %s717_s2 = inlined_call_operand.vmem [shape: f32[64,1], index: 2, kind: input, shape index: {}]   ;;  %s718_s3 = inlined_call_operand.vmem [shape: f32[32,64], index: 3, kind: input, shape index: {}]   ;;  %s719_s4 = inlined_call_operand.vmem [shape: f32[32,1], index: 4, kind: input, shape index: {}]   ;;  %s720_s5 = inlined_call_operand.vmem [shape: f32[1,32], index: 5, kind: input, shape index: {}]   ;;  %s721_s6 = inlined_call_operand.<no memory space> [shape: f32[1,1], index: 6, kind: input, shape index: {}]   ;;  %s722_s7 = inlined_call_operand.hbm [shape: f32[1,8], index: 7, kind: output, shape index: {}]  }
   0x1   :  { %v12_v0 = vstv %s721_s6 }
   0x2   :  { %13 = vst [vmem:[#allocation2] sm:$0x1] %v12_v0 }
   0x3   :  { %v37_v1 = vld [vmem:[%s715_s0] sm:$0xff]  ;;  %vm86_vm0 = vcmask 39936   ;;  %v30_v3 = vld [vmem:[%s716_s1 + $0x8] sm:$0xff]  ;;  %v573_v4 = vmov 0   ;;  %v31_v5 = vld [vmem:[%s716_s1 + $0x10] sm:$0xff] }
   0x4   :  { %v29_v2 = vld [vmem:[%s716_s1] sm:$0xff]  ;;  %498 = vmatprep.subr.msk.mxu0 %vm86_vm0, %v37_v1  ;;  %549 = vset.pattern.permute.xlu0 %v573_v4  ;;  %v45_v6 = vld [vmem:[%s717_s2 + $0x38] sm:$0xff]  ;;  %v43_v7 = vld [vmem:[%s717_s2 + $0x28] sm:$0xff] }
   0x5   :  { %500 = vmatprep.mubr.msk.f32.mxu0 %vm86_vm0, %v29_v2  ;;  %499 = vmatpush3.xpose.msk.msra.mxu0 %vm86_vm0, %v37_v1  ;;  %v44_v8 = vld [vmem:[%s717_s2 + $0x30] sm:$0xff]  ;;  %v42_v9 = vld [vmem:[%s717_s2 + $0x20] sm:$0xff]  ;;  %v32_v10 = vld [vmem:[%s716_s1 + $0x18] sm:$0xff] }
   0x6   :  { %550 = vset.pattern.permute.xlu1 %v573_v4  ;;  %83 = vperm.xlu0 %549, %v45_v6   ;;  %v33_v11 = vld [vmem:[%s716_s1 + $0x20] sm:$0xff] }
   0x7   :  { %73 = vperm.xlu1 %550, %v43_v7  }
   0x8   :  { %501 = vmatmul.mubr.msk.f32.vlgmr.msra.gmra.mxu0 %vm86_vm0, %v30_v3 }
   0x9   :  { %503 = vmatprep.mubr.msk.f32.mxu0 %vm86_vm0, %v31_v5 }
   0xa   :  { %14 = vsyncpa [#allocation4], 0  ;;  %78 = vperm.xlu0 %549, %v44_v8   ;;  %v41_v12 = vld [vmem:[%s717_s2 + $0x18] sm:$0xff]  ;;  %v40_v13 = vld [vmem:[%s717_s2 + $0x10] sm:$0xff]  ;;  %vm255_vm1 = vcmask 523264   ;;  %v574_v60 = vmov 0.0  }
   0xb   :  { %68 = vperm.xlu1 %550, %v42_v9   ;;  %v34_v14 = vld [vmem:[%s716_s1 + $0x28] sm:$0xff]  ;;  %v35_v15 = vld [vmem:[%s716_s1 + $0x30] sm:$0xff]  ;;  %v38_v17 = vld [vmem:[%s717_s2] sm:$0xff]  ;;  %534 = vmatprep.subr.mxu0 %v574_v60  ;;  %vm575_vm2 = vmmov 0   ;;  %vm368_vm3 = vcmask 261120   ;;  %s576_s24 = smov [#allocation3]  }
   0xc   :  { %504 = vmatmul.mubr.msk.f32.gmra.mxu0 %vm86_vm0, %v32_v10  ;;  %v39_v16 = vld [vmem:[%s717_s2 + $0x8] sm:$0xff]  ;;  %v36_v18 = vld [vmem:[%s716_s1 + $0x38] sm:$0xff]  ;;  %v233_v20 = vld [vmem:[%s719_s4 + $0x10] sm:$0xff]  ;;  %s450_s25 = sshll.u32 %s576_s24, 4  ;;  %vm442_vm4 = vcmask 57344   ;;  %s451_s25 = int_to_ptr.vmem [resolvable:$true] %s450_s25 }
   0xd   :  { %506 = vmatprep.mubr.msk.f32.mxu0 %vm86_vm0, %v33_v11  ;;  %v234_v19 = vld [vmem:[%s719_s4 + $0x18] sm:$0xff]  ;;  %v232_v21 = vld [vmem:[%s719_s4 + $0x8] sm:$0xff]  ;;  %v231_v22 = vld [vmem:[%s719_s4] sm:$0xff]  ;;  %s551_s26 = scalar_lea.vmem %s451_s25, 16  ;;  %p556_p1 = scmp.lt.s32.totalorder %s451_s25, %s451_s25 }
   0xe   :  { %63 = vperm.xlu0 %549, %v41_v12   ;;  %v358_v23 = vld [vmem:[#allocation2] sm:$0x1]  ;;  %v228_v57 = vld [vmem:[%s718_s3 + $0x8] sm:$0xff]  ;;  %v229_v58 = vld [vmem:[%s718_s3 + $0x10] sm:$0xff]  ;;  %p552_p0 = scmp.ne.s32.totalorder %s451_s25, %s551_s26 }
   0xf   :  { %58 = vperm.xlu1 %550, %v40_v13   ;;  %v227_v24 = vld [vmem:[%s718_s3] sm:$0xff]  ;;  %v230_v59 = vld [vmem:[%s718_s3 + $0x18] sm:$0xff] }
  0x10   :  { %507 = vmatmul.mubr.msk.f32.gmra.mxu0 %vm86_vm0, %v34_v14  ;;  %528 = vmatprep.mubr.msk.f32.mxu1 %vm255_vm1, %v227_v24  ;;  %v357_v13 = vld [vmem:[%s720_s5] sm:$0x1]  ;;  %v364_v14 = vlaneseq  ;;  %s555_s5 = scalar_lea.vmem %s451_s25, 32 }
  0x11   :  { %509 = vmatprep.mubr.msk.f32.mxu0 %vm86_vm0, %v35_v15  ;;  %p557_p2 = scmp.lt.s32.totalorder %s555_s5, %s551_s26 }
  0x12   :  { %53 = vperm.xlu0 %549, %v39_v16   ;;  %v365_v15 = vshrl.u32 %v364_v14, 7 }
  0x13   :  { %48 = vperm.xlu1 %550, %v38_v17   ;;  %p558_p3 = por %p557_p2, %p556_p1 }
  0x14   :  { %510 = vmatmul.mubr.msk.f32.gmra.mxu0 %vm86_vm0, %v36_v18  ;;  %v366_v16 = vsub.s32 0, %v365_v15 }
  0x15   :  { %542 = vmatprep.mubr.msk.f32.mxu0 %vm575_vm2, %v574_v60  ;;  %p559_p4 = pnand %p558_p3, %p552_p0 }
  0x16   :  { %252 = vperm.xlu0 %549, %v234_v19  }
  0x17   :  { %247 = vperm.xlu1 %550, %v233_v20  }
  0x1a   :  { %242 = vperm.xlu0 %549, %v232_v21  }
  0x1b   :  { %237 = vperm.xlu1 %550, %v231_v22  }
  0x1e   :  { %361 = vperm.xlu0 %549, %v358_v23  }
  0x81   :  { %v84_v27 = vpop.permute.xlu0 %83 }
  0x82   :  { %v74_v28 = vpop.permute.xlu1 %73 }
  0x85   :  { %v79_v32 = vpop.permute.xlu0 %78 }
  0x86   :  { %v69_v33 = vpop.permute.xlu1 %68 }
  0x89   :  { %v64_v41 = vpop.permute.xlu0 %63 }
  0x8a   :  { %v59_v42 = vpop.permute.xlu1 %58 }
  0x8d   :  { %v54_v49 = vpop.permute.xlu0 %53 }
  0x8e   :  { %v49_v50 = vpop.permute.xlu1 %48 }
  0x91   :  { %v253_v61 = vpop.permute.xlu0 %252 }
  0x92   :  { %v248_v63 = vpop.permute.xlu1 %247 }
  0x95   :  { %v243_v3 = vpop.permute.xlu0 %242 }
  0x96   :  { %v238_v8 = vpop.permute.xlu1 %237 }
  0x99   :  { %v362_v17 = vpop.permute.xlu0 %361 }
  0x9a   :  { %v367_v18 = vrot.slane %v362_v17, %v366_v16 }
  0xc8   :  { %v502_v25 = vpop.f32.mrf.mxu0 }
  0xc9   :  { %v186_v51 = vadd.f32 %v502_v25, %v54_v49 }
  0xca   :  { %v180_v26 = vpop.f32.mrf.mxu0 }
  0xcb   :  { %v181_v53 = vadd.f32 %v180_v26, %v49_v50  ;;  %v220_v55 = vmax.f32 %v186_v51, 0.0 }
  0xcc   :  { %v505_v29 = vpop.f32.mrf.mxu0 }
  0xcd   :  { %v196_v45 = vadd.f32 %v505_v29, %v64_v41  ;;  %v219_v56 = vmax.f32 %v181_v53, 0.0 }
  0xce   :  { %v190_v30 = vpop.f32.mrf.mxu0 }
  0xcf   :  { %v191_v47 = vadd.f32 %v190_v30, %v59_v42  ;;  %v222_v52 = vmax.f32 %v196_v45, 0.0 }
  0xd0   :  { %v508_v31 = vpop.f32.mrf.mxu0 }
  0xd1   :  { %v206_v38 = vadd.f32 %v508_v31, %v74_v28  ;;  %v221_v54 = vmax.f32 %v191_v47, 0.0 }
  0xd2   :  { %v200_v34 = vpop.f32.mrf.mxu0 }
  0xd3   :  { %v201_v43 = vadd.f32 %v200_v34, %v69_v33  ;;  %v224_v46 = vmax.f32 %v206_v38, 0.0 }
  0xd4   :  { %v511_v35 = vpop.f32.mrf.mxu0 }
  0xd5   :  { %v216_v36 = vadd.f32 %v511_v35, %v84_v27  ;;  %v223_v48 = vmax.f32 %v201_v43, 0.0 }
  0xd6   :  { %v210_v37 = vpop.f32.mrf.mxu0 }
  0xd7   :  { %v226_v39 = vmax.f32 %v216_v36, 0.0  ;;  %v211_v40 = vadd.f32 %v210_v37, %v79_v32 }
  0xd9   :  { %v225_v44 = vmax.f32 %v211_v40, 0.0  ;;  %512 = vmatprep.subr.mxu1 %v226_v39 }
  0xda   :  { %513 = vmatpush3.msra.mxu1 %v226_v39 }
  0xdb   :  { %514 = vmatprep.subr.mxu1 %v225_v44 }
  0xdc   :  { %515 = vmatpush3.msra.mxu1 %v225_v44 }
  0xdd   :  { %516 = vmatprep.subr.mxu1 %v224_v46 }
  0xde   :  { %517 = vmatpush3.msra.mxu1 %v224_v46 }
  0xdf   :  { %518 = vmatprep.subr.mxu1 %v223_v48 }
  0xe0   :  { %519 = vmatpush3.msra.mxu1 %v223_v48 }
  0xe1   :  { %520 = vmatprep.subr.mxu1 %v222_v52 }
  0xe2   :  { %521 = vmatpush3.msra.mxu1 %v222_v52 }
  0xe3   :  { %522 = vmatprep.subr.mxu1 %v221_v54 }
  0xe4   :  { %523 = vmatpush3.msra.mxu1 %v221_v54 }
  0xe5   :  { %524 = vmatprep.subr.mxu1 %v220_v55 }
  0xe6   :  { %525 = vmatpush3.msra.mxu1 %v220_v55 }
  0xe7   :  { %526 = vmatprep.subr.mxu1 %v219_v56 }
  0xe8   :  { %527 = vmatpush3.msra.mxu1 %v219_v56 }
  0xe9   :  { %529 = vmatmul.mubr.msk.f32.vlgmr.msra.gmra.mxu1 %vm255_vm1, %v228_v57 }
  0xea   :  { %531 = vmatprep.mubr.msk.f32.mxu1 %vm255_vm1, %v229_v58 }
  0xed   :  { %532 = vmatmul.mubr.msk.f32.gmra.mxu1 %vm255_vm1, %v230_v59 }
 0x1a9   :  { %v530_v62 = vpop.f32.mrf.mxu1 }
 0x1aa   :  { %v340_v5 = vadd.f32 %v530_v62, %v243_v3 }
 0x1ab   :  { %v334_v0 = vpop.f32.mrf.mxu1 }
 0x1ac   :  { %v335_v9 = vadd.f32 %v334_v0, %v238_v8  ;;  %v354_v11 = vmax.f32 %v340_v5, 0.0 }
 0x1ad   :  { %v533_v1 = vpop.f32.mrf.mxu1 }
 0x1ae   :  { %v350_v2 = vadd.f32 %v533_v1, %v253_v61  ;;  %v353_v12 = vmax.f32 %v335_v9, 0.0 }
 0x1af   :  { %v344_v4 = vpop.f32.mrf.mxu1 }
 0x1b0   :  { %v356_v6 = vmax.f32 %v350_v2, 0.0  ;;  %v345_v7 = vadd.f32 %v344_v4, %v248_v63 }
 0x1b2   :  { %v355_v10 = vmax.f32 %v345_v7, 0.0  ;;  %535 = vmatpush3.msra.mxu0 %v356_v6 }
 0x1b3   :  { %536 = vmatprep.subr.mxu0 %v574_v60 }
 0x1b4   :  { %537 = vmatpush3.msra.mxu0 %v355_v10 }
 0x1b5   :  { %538 = vmatprep.subr.mxu0 %v574_v60 }
 0x1b6   :  { %539 = vmatpush3.msra.mxu0 %v354_v11 }
 0x1b7   :  { %540 = vmatprep.subr.mxu0 %v574_v60 }
 0x1b8   :  { %541 = vmatpush3.msra.mxu0 %v353_v12 }
 0x1b9   :  { %543 = vmatmul.mubr.msk.f32.vlgmr.msra.gmra.mxu0 %vm368_vm3, %v357_v13 }
 0x279   :  { %v438_v19 = vpop.f32.mrf.mxu0 }
 0x27a   :  { %v439_v20 = vadd.f32 %v438_v19, %v367_v18 }
 0x27b   :  { %v544_v21 = vpop.f32.mrf.mxu0 }
 0x27c   :  { %443 = vst.msk [vmem:[#allocation3] sm:$0x1] %vm442_vm4, %v439_v20 }
 0x27d   :  { %562 = shalt.err (!%p559_p4)
}
 0x27e   :  { %453 = dma.vmem_to_hbm [thread:$0]  %s451_s25, 16, %s722_s7, [#allocation4]  }
 0x27f   :  { %571 = dma.done.wait [#allocation4], 16  }
 0x280   :  { %572 = vsyncadd [#allocation4], 4294967280 }
 0x281   :  { %457 = vsyncpa [#allocation4], 1 }

</bundles_post_ra>
